<compile_context>
chip_gen: v6e
topology: v6e:2x2x1
jax: 0.10.0
libtpu: 0.0.40
codegen_flags: <defaults>
</compile_context>

<pallas_src>
import jax
import jax.numpy as jnp
from jax.experimental import pallas as pl
from jax.experimental.pallas import tpu as pltpu

LANES = 128
FEATURES = 8
SPR = LANES // FEATURES  # 16 samples packed per 128-lane row


def _linear_sigmoid_kernel(x_ref, w_ref, b_ref, o_ref):
    # x_ref: (TBR, 128) VMEM  -- 16 samples x 8 features per lane-dense row
    # w_ref: (128, 16)  VMEM  -- block-diagonal selection-weight matrix (resident)
    # b_ref: (1, 1)     SMEM  -- bias scalar
    # o_ref: (TBR, 16)  VMEM  -- y for the 16 packed samples of each row
    y = jnp.dot(x_ref[...], w_ref[...], preferred_element_type=jnp.float32)
    y = y + b_ref[0, 0]
    o_ref[...] = jax.nn.sigmoid(y).astype(o_ref.dtype)


def model_forward(x, weight, bias, *, block_rows=8192):
    """x: (B, 8) f32, weight: (1, 8) f32 (PyTorch layout), bias: (1,) f32.

    Returns sigmoid(x @ weight.T + bias) with shape (B, 1).
    """
    B, K = x.shape
    assert K == FEATURES
    x = x.astype(jnp.float32)

    # ---- pack: (B, 8) -> (rows, 128); 16 samples per lane-dense row ---------
    rows_needed = -(-B // SPR)  # ceil(B / 16)
    if rows_needed <= block_rows:
        tbr = max(rows_needed, 1)          # single block == full array (always legal)
        rows = tbr
    else:
        tbr = block_rows                   # multiple of 8 -> (8,128)-aligned blocks
        rows = -(-rows_needed // tbr) * tbr
    b_pad = rows * SPR
    if b_pad != B:
        # NOTE: padding copies x; large-B callers should keep B % (block_rows*16) == 0.
        x = jnp.pad(x, ((0, b_pad - B), (0, 0)))
    x_packed = x.reshape(rows, LANES)      # contiguous merge of the last dims (free)

    # ---- weights: block-diagonal selection matrix, built once ---------------
    # w_sel[8*s + k, s] = w[k], so (x_packed @ w_sel)[r, s] = <x[16r+s, :], w>.
    w = weight.reshape(-1).astype(jnp.float32)                              # (8,)
    w_sel = jnp.kron(jnp.eye(SPR, dtype=jnp.float32), w.reshape(K, 1))      # (128, 16)
    b = bias.reshape(1, 1).astype(jnp.float32)                              # SMEM scalar

    grid = (rows // tbr,)

    out = pl.pallas_call(
        _linear_sigmoid_kernel,
        out_shape=jax.ShapeDtypeStruct((rows, SPR), jnp.float32),
        grid=grid,
        in_specs=[
            pl.BlockSpec((tbr, LANES), lambda i: (i, 0)),            # packed x tile
            pl.BlockSpec((LANES, SPR), lambda i: (0, 0)),            # weights, resident
            pl.BlockSpec(memory_space=pltpu.MemorySpace.SMEM),       # bias scalar
        ],
        out_specs=pl.BlockSpec((tbr, SPR), lambda i: (i, 0)),
        compiler_params=pltpu.CompilerParams(
            dimension_semantics=("parallel",),
            vmem_limit_bytes=32 * 1024 * 1024,
        ),
    )(x_packed, w_sel, b)

    # (rows, 16) row-major == sample order, so this reshape is contiguous/free.
    return out.reshape(b_pad, 1)[:B]


def reference_forward(x, weight, bias):
    return jax.nn.sigmoid(x @ weight.T + bias)


if __name__ == "__main__":
    key = jax.random.PRNGKey(0)
    kx, kw, kb, kx2 = jax.random.split(key, 4)

    B, IN, OUT = 8, 8, 1
    x = jax.random.normal(kx, (B, IN), dtype=jnp.float32)

    # Deterministic init mimicking torch.nn.Linear(8, 1): U(-1/sqrt(8), 1/sqrt(8))
    bound = 1.0 / jnp.sqrt(jnp.float32(IN))
    weight = jax.random.uniform(kw, (OUT, IN), minval=-bound, maxval=bound,
                                dtype=jnp.float32)
    bias = jax.random.uniform(kb, (OUT,), minval=-bound, maxval=bound,
                              dtype=jnp.float32)

    out = model_forward(x, weight, bias)
    jax.block_until_ready(out)
    ref = reference_forward(x, weight, bias)
    assert out.shape == (B, OUT)
    assert jnp.allclose(out, ref, atol=1e-5, rtol=1e-5)

    # Exercise the packing / padding path with a batch that is not a multiple of 16.
    B2 = 1000
    x2 = jax.random.normal(kx2, (B2, IN), dtype=jnp.float32)
    out2 = model_forward(x2, weight, bias)
    jax.block_until_ready(out2)
    ref2 = reference_forward(x2, weight, bias)
    assert out2.shape == (B2, OUT)
    assert jnp.allclose(out2, ref2, atol=1e-5, rtol=1e-5)

    print("KERNEL_OK")
</pallas_src>

<mosaic_0001>
module attributes {stable_mosaic.version = 11 : i64} {
  func.func @_linear_sigmoid_kernel(%arg0: i32, %arg1: memref<1x128xf32, #tpu.memory_space<vmem>>, %arg2: memref<128x16xf32, #tpu.memory_space<vmem>>, %arg3: memref<1x1xf32, #tpu.memory_space<smem>>, %arg4: memref<1x16xf32, #tpu.memory_space<vmem>>) attributes {dimension_semantics = [#tpu.dimension_semantics<parallel>], iteration_bounds = array<i64: 1>, scalar_prefetch = 0 : i64, scratch_operands = 0 : i64, tpu.core_type = #tpu.core_type<tc>, window_params = [{transform_indices = @transform_0, window_bounds = array<i64: 1, 128>}, {pipeline_mode = #tpu.pipeline_mode<synchronous>, transform_indices = @transform_1, window_bounds = array<i64: 128, 16>}, {transform_indices = @transform_2, window_bounds = array<i64: 1, 1>}, {transform_indices = @transform_3, window_bounds = array<i64: 1, 16>}]} {
    %c0 = arith.constant 0 : index
    %c0_0 = arith.constant 0 : index
    %0 = vector.load %arg1[%c0, %c0_0] : memref<1x128xf32, #tpu.memory_space<vmem>>, vector<1x128xf32>
    %c0_1 = arith.constant 0 : index
    %c0_2 = arith.constant 0 : index
    %1 = vector.load %arg2[%c0_1, %c0_2] : memref<128x16xf32, #tpu.memory_space<vmem>>, vector<128x16xf32>
    %cst = arith.constant dense<0.000000e+00> : vector<1x16xf32>
    %2 = tpu.matmul %0, %1, %cst {dimension_numbers = #tpu.dot_dimension_numbers<[1], [0], [0], [1], [0, 0, 1, 1], [], []>} : vector<1x128xf32>, vector<128x16xf32>, vector<1x16xf32> -> vector<1x16xf32>
    %c0_3 = arith.constant 0 : index
    %c0_4 = arith.constant 0 : index
    %3 = memref.load %arg3[%c0_3, %c0_4] : memref<1x1xf32, #tpu.memory_space<smem>>
    %4 = vector.broadcast %3 : f32 to vector<1x16xf32>
    %5 = arith.addf %2, %4 : vector<1x16xf32>
    %6 = arith.negf %5 : vector<1x16xf32>
    %7 = math.exp %6 : vector<1x16xf32>
    %cst_5 = arith.constant 1.000000e+00 : f32
    %8 = vector.broadcast %cst_5 : f32 to vector<1x16xf32>
    %9 = arith.addf %8, %7 : vector<1x16xf32>
    %10 = arith.divf %8, %9 : vector<1x16xf32>
    %c0_6 = arith.constant 0 : index
    %c0_7 = arith.constant 0 : index
    %11 = vector.load %arg4[%c0_6, %c0_7] : memref<1x16xf32, #tpu.memory_space<vmem>>, vector<1x16xf32>
    tpu.vector_store %arg4[%c0_6, %c0_7], %10 {strides = array<i32>} : memref<1x16xf32, #tpu.memory_space<vmem>>, vector<1x16xf32>,
    return
  }
  func.func @transform_0(%arg0: i32) -> (i32, i32) {
    %c0_i32 = arith.constant 0 : i32
    %c0_i32_0 = arith.constant 0 : i32
    return %arg0, %c0_i32 : i32, i32
  }
  func.func @transform_1(%arg0: i32) -> (i32, i32) {
    %c0_i32 = arith.constant 0 : i32
    %c0_i32_0 = arith.constant 0 : i32
    %c0_i32_1 = arith.constant 0 : i32
    return %c0_i32, %c0_i32_0 : i32, i32
  }
  func.func @transform_2(%arg0: i32) -> (i32, i32) {
    %c0_i32 = arith.constant 0 : i32
    %c0_i32_0 = arith.constant 0 : i32
    %c0_i32_1 = arith.constant 0 : i32
    return %c0_i32, %c0_i32_0 : i32, i32
  }
  func.func @transform_3(%arg0: i32) -> (i32, i32) {
    %c0_i32 = arith.constant 0 : i32
    %c0_i32_0 = arith.constant 0 : i32
    return %arg0, %c0_i32 : i32, i32
  }
}

</mosaic_0001>

<bundles_post_ra>
// kernel: tpu_custom_call.1
= control target key start
LH: loop header
LB: loop body
LE: loop exit
PB: predicated region body
PF: predicated region fallthrough
CT: control target
= control target key end

     0   :  { %v209_v1 = vmov 0.0   ;;  %vm210_vm0 = vmmov 0   ;;  %s289_s0 = inlined_call_operand.vmem [shape: f32[1,128], index: 0, kind: input, shape index: {}]   ;;  %s290_s1 = inlined_call_operand.vmem [shape: f32[128,16], index: 1, kind: input, shape index: {}]   ;;  %s291_s2 = inlined_call_operand.<no memory space> [shape: f32[1,1], index: 2, kind: input, shape index: {}]   ;;  %s292_s3 = inlined_call_operand.hbm [shape: f32[1,16], index: 3, kind: output, shape index: {}]  }
   0x1   :  { %v32_v0 = vld [vmem:[%s290_s1 + $0x78] sm:$0xff]  ;;  %145 = vmatprep.subr.mxu0 %v209_v1  ;;  %v31_v2 = vld [vmem:[%s290_s1 + $0x70] sm:$0xff]  ;;  %177 = vmatprep.mubr.msk.f32.mxu0 %vm210_vm0, %v209_v1  ;;  %v30_v3 = vld [vmem:[%s290_s1 + $0x68] sm:$0xff] }
   0x2   :  { %146 = vmatpush3.msra.mxu0 %v32_v0  ;;  %v29_v4 = vld [vmem:[%s290_s1 + $0x60] sm:$0xff] }
   0x3   :  { %147 = vmatprep.subr.mxu0 %v209_v1 }
   0x4   :  { %148 = vmatpush3.msra.mxu0 %v31_v2 }
   0x5   :  { %149 = vmatprep.subr.mxu0 %v209_v1 }
   0x6   :  { %9 = vsyncpa [#allocation4], 0  ;;  %150 = vmatpush3.msra.mxu0 %v30_v3  ;;  %v28_v5 = vld [vmem:[%s290_s1 + $0x58] sm:$0xff]  ;;  %v27_v6 = vld [vmem:[%s290_s1 + $0x50] sm:$0xff]  ;;  %v34_v18 = vstv %s291_s2  ;;  %vm111_vm1 = vcmask 122880  }
   0x7   :  { %151 = vmatprep.subr.mxu0 %v209_v1  ;;  %v26_v7 = vld [vmem:[%s290_s1 + $0x48] sm:$0xff]  ;;  %v25_v8 = vld [vmem:[%s290_s1 + $0x40] sm:$0xff]  ;;  %v24_v9 = vld [vmem:[%s290_s1 + $0x38] sm:$0xff] }
   0x8   :  { %152 = vmatpush3.msra.mxu0 %v29_v4  ;;  %v23_v10 = vld [vmem:[%s290_s1 + $0x30] sm:$0xff]  ;;  %v22_v11 = vld [vmem:[%s290_s1 + $0x28] sm:$0xff]  ;;  %v21_v12 = vld [vmem:[%s290_s1 + $0x20] sm:$0xff] }
   0x9   :  { %153 = vmatprep.subr.mxu0 %v209_v1  ;;  %v20_v13 = vld [vmem:[%s290_s1 + $0x18] sm:$0xff]  ;;  %v19_v14 = vld [vmem:[%s290_s1 + $0x10] sm:$0xff]  ;;  %v18_v15 = vld [vmem:[%s290_s1 + $0x8] sm:$0xff] }
   0xa   :  { %154 = vmatpush3.msra.mxu0 %v28_v5  ;;  %v17_v16 = vld [vmem:[%s290_s1] sm:$0xff]  ;;  %s211_s1 = smov [#allocation3]  }
   0xb   :  { %155 = vmatprep.subr.mxu0 %v209_v1  ;;  %v16_v17 = vld [vmem:[%s289_s0] sm:$0x1]  ;;  %s119_s21 = sshll.u32 %s211_s1, 4  ;;  %s120_s21 = int_to_ptr.vmem [resolvable:$true] %s119_s21 }
   0xc   :  { %156 = vmatpush3.msra.mxu0 %v27_v6  ;;  %s187_s0 = scalar_lea.vmem %s120_s21, 16  ;;  %s191_s22 = scalar_lea.vmem %s120_s21, 32 }
   0xd   :  { %157 = vmatprep.subr.mxu0 %v209_v1  ;;  %p188_p0 = scmp.ne.s32.totalorder %s120_s21, %s187_s0  ;;  %p192_p1 = scmp.lt.s32.totalorder %s120_s21, %s120_s21 }
   0xe   :  { %158 = vmatpush3.msra.mxu0 %v26_v7  ;;  %p193_p2 = scmp.lt.s32.totalorder %s191_s22, %s187_s0 }
   0xf   :  { %159 = vmatprep.subr.mxu0 %v209_v1 }
  0x10   :  { %160 = vmatpush3.msra.mxu0 %v25_v8  ;;  %p194_p3 = por %p193_p2, %p192_p1 }
  0x11   :  { %161 = vmatprep.subr.mxu0 %v209_v1 }
  0x12   :  { %162 = vmatpush3.msra.mxu0 %v24_v9  ;;  %p195_p4 = pnand %p194_p3, %p188_p0 }
  0x13   :  { %163 = vmatprep.subr.mxu0 %v209_v1 }
  0x14   :  { %164 = vmatpush3.msra.mxu0 %v23_v10 }
  0x15   :  { %165 = vmatprep.subr.mxu0 %v209_v1 }
  0x16   :  { %166 = vmatpush3.msra.mxu0 %v22_v11 }
  0x17   :  { %167 = vmatprep.subr.mxu0 %v209_v1 }
  0x18   :  { %168 = vmatpush3.msra.mxu0 %v21_v12 }
  0x19   :  { %169 = vmatprep.subr.mxu0 %v209_v1 }
  0x1a   :  { %170 = vmatpush3.msra.mxu0 %v20_v13 }
  0x1b   :  { %171 = vmatprep.subr.mxu0 %v209_v1 }
  0x1c   :  { %172 = vmatpush3.msra.mxu0 %v19_v14 }
  0x1d   :  { %173 = vmatprep.subr.mxu0 %v209_v1 }
  0x1e   :  { %174 = vmatpush3.msra.mxu0 %v18_v15 }
  0x1f   :  { %175 = vmatprep.subr.mxu0 %v209_v1 }
  0x20   :  { %176 = vmatpush3.msra.mxu0 %v17_v16 }
  0x21   :  { %178 = vmatmul.mubr.f32.vlgmr.msra.gmra.mxu0 %v16_v17 }
  0xe1   :  { %v101_v19 = vpop.f32.mrf.mxu0 }
  0xe2   :  { %v102_v20 = vadd.f32 %v101_v19, %v34_v18 }
  0xe3   :  { %v179_v21 = vpop.f32.mrf.mxu0 }
  0xe4   :  { %v127_v22 = vmul.f32 -1.442695, %v102_v20 }
  0xe6   :  { %183 = vpow2.f32 %v127_v22 }
  0xf3   :  { %v184_v23 = vpop.eup %183 }
  0xf4   :  { %v108_v24 = vadd.f32 1.0, %v184_v23 }
  0xf6   :  { %185 = vrcp.f32 %v108_v24 }
 0x103   :  { %v186_v25 = vpop.eup %185 }
 0x104   :  { %112 = vst.msk [vmem:[#allocation3] sm:$0x1] %vm111_vm1, %v186_v25 }
 0x105   :  { %198 = shalt.err (!%p195_p4)
}
 0x106   :  { %122 = dma.vmem_to_hbm [thread:$0]  %s120_s21, 16, %s292_s3, [#allocation4]  }
 0x107   :  { %207 = dma.done.wait [#allocation4], 16  }
 0x108   :  { %208 = vsyncadd [#allocation4], 4294967280 }
 0x109   :  { %126 = vsyncpa [#allocation4], 1 }

</bundles_post_ra>
